<compile_context>
chip_gen: v7x
topology: tpu7x:2x2x1
jax: 0.10.0
libtpu: 0.0.40
codegen_flags: <defaults>
</compile_context>

<pallas_src>
import jax
import jax.numpy as jnp
from jax import lax
from jax.experimental import pallas as pl
from jax.experimental.pallas import tpu as pltpu


def _round_up(x, m):
    return ((x + m - 1) // m) * m


def _interppo_fwd_kernel(x_ref, w1_ref, w23_ref, b_ref, w4_ref, b4_ref, out_ref):
    """Fused enc_s + dec_a + tanh with the w2/w3 linears algebraically folded.

    x_ref   : (block_b, S)   input tile in its natural HBM layout
    w1_ref  : (M, S)         enc_s[0] weight (PyTorch (out, in) layout)
    w23_ref : (M, M)         w3 @ w2  (enc_s[2] folded into dec_a[0])
    b_ref   : (M, 2)         columns: b1 | (w3 @ b2 + b3)
    w4_ref  : (A, M)         dec_a[2] weight
    b4_ref  : (A, 1)
    out_ref : (A, block_b)   lane-dense output tile (batch on the lane axis)
    """
    # Cast x to the weight compute dtype in-register (cheap VPU op) instead of
    # paying an extra HBM read+write pass for a wrapper-side cast.
    x = x_ref[...].astype(w1_ref.dtype)                 # (block_b, S)
    b1 = b_ref[:, 0:1]
    b23 = b_ref[:, 1:2]

    # h1 = relu(W1 x^T + b1): contract over the feature axis of both operands,
    # producing (M, block_b) directly -> batch stays on the lane axis, no
    # wrapper transpose of x needed.
    h = lax.dot_general(w1_ref[...], x,
                        dimension_numbers=(((1,), (1,)), ((), ())),
                        preferred_element_type=jnp.float32) + b1
    h = jnp.maximum(h, 0.0)

    # w3 @ (w2 h1 + b2) + b3  ==  w23 h1 + b23   (one MxM matmul, not two)
    h = jnp.dot(w23_ref[...], h.astype(w23_ref.dtype),
                preferred_element_type=jnp.float32) + b23
    h = jnp.maximum(h, 0.0)

    a = jnp.dot(w4_ref[...], h.astype(w4_ref.dtype),
                preferred_element_type=jnp.float32) + b4_ref[...]
    out_ref[...] = jnp.tanh(a).astype(out_ref.dtype)


def interppo_forward(x, params, *, block_b=4096, compute_dtype=jnp.bfloat16):
    """InterPPO.forward for the 1-D state branch.

    x: (B, S) float32
    params: w1 (M,S) b1 (M,1) | w2 (M,M) b2 (M,1) | w3 (M,M) b3 (M,1)
            w4 (A,M) b4 (A,1)   (PyTorch (out, in) weight layout)
    returns: (B, A) float32 == tanh(dec_a(enc_s(x)))
    """
    B, S = x.shape
    M = params["w1"].shape[0]
    A = params["w4"].shape[0]

    # --- batch tiling --------------------------------------------------------
    # Batch lives on the lane axis inside the kernel, so the tile must be a
    # multiple of 128.  Use a large default tile (per-step overhead dominates
    # this tiny MLP), but keep >= 2 grid steps whenever B allows so the
    # "parallel" grid axis can shard across v7x's two TensorCores.
    B_pad128 = _round_up(B, 128)
    block_b = _round_up(max(block_b, 128), 128)
    block_b = min(block_b, B_pad128)
    if B_pad128 >= 256:
        block_b = min(block_b, max(128, (B_pad128 // 256) * 128))
    B_pad = _round_up(B, block_b)
    grid = (B_pad // block_b,)

    # --- parameter prep (tiny, done once per call on the XLA side) -----------
    # Fold enc_s[2] into dec_a[0]:  w3 (w2 h + b2) + b3 == (w3 w2) h + (w3 b2 + b3).
    hi = lax.Precision.HIGHEST
    w23 = jnp.dot(params["w3"], params["w2"], precision=hi)
    b23 = jnp.dot(params["w3"], params["b2"], precision=hi) + params["b3"]

    w1 = params["w1"].astype(compute_dtype)
    w23 = w23.astype(compute_dtype)
    w4 = params["w4"].astype(compute_dtype)
    b12 = jnp.concatenate([params["b1"], b23], axis=1).astype(jnp.float32)  # (M, 2)
    b4 = params["b4"].astype(jnp.float32)                                   # (A, 1)

    # x stays in its natural (B, S) layout and dtype; only pad a ragged tail.
    x_in = x if B_pad == B else jnp.pad(x, ((0, B_pad - B), (0, 0)))

    def rep(shape):
        # Weights / biases are small and replicated across the batch grid axis.
        return pl.BlockSpec(shape, lambda i: (0, 0))

    wsize = jnp.dtype(compute_dtype).itemsize
    cost = pl.CostEstimate(
        flops=2 * B_pad * (S * M + M * M + M * A),
        transcendentals=B_pad * A,
        bytes_accessed=(x_in.dtype.itemsize * B_pad * S
                        + wsize * (S * M + M * M + A * M)
                        + 4 * (B_pad * A + 2 * M + A)),
    )

    out_t = pl.pallas_call(
        _interppo_fwd_kernel,
        out_shape=jax.ShapeDtypeStruct((A, B_pad), jnp.float32),
        grid_spec=pltpu.PrefetchScalarGridSpec(
            num_scalar_prefetch=0,
            grid=grid,
            in_specs=[
                pl.BlockSpec((block_b, S), lambda i: (i, 0)),   # x tile (natural layout)
                rep((M, S)),                                    # w1
                rep((M, M)),                                    # w23 = w3 @ w2
                rep((M, 2)),                                    # b1 | b23
                rep((A, M)),                                    # w4
                rep((A, 1)),                                    # b4
            ],
            out_specs=pl.BlockSpec((A, block_b), lambda i: (0, i)),
        ),
        compiler_params=pltpu.CompilerParams(
            dimension_semantics=("parallel",)),
        cost_estimate=cost,
    )(x_in, w1, w23, b12, w4, b4)

    # Output is a tiny (A, B_pad) lane-dense slab; the trailing transpose/slice
    # is negligible (A=4) compared with the kernel's x traffic.
    return out_t[:, :B].T                                          # (B, A)


def init_params(key, state_dim, action_dim, mid_dim):
    """PyTorch-style init: Linear default U[-1/sqrt(fan_in), +]; dec_a[-1] uses
    orthogonal(std=0.01) weights and bias 1e-6 (the `layer_norm` helper)."""
    keys = jax.random.split(key, 8)

    def linear(kw, kb, fan_in, fan_out):
        bound = 1.0 / jnp.sqrt(float(fan_in))
        w = jax.random.uniform(kw, (fan_out, fan_in),
                               minval=-bound, maxval=bound, dtype=jnp.float32)
        b = jax.random.uniform(kb, (fan_out, 1),
                               minval=-bound, maxval=bound, dtype=jnp.float32)
        return w, b

    w1, b1 = linear(keys[0], keys[1], state_dim, mid_dim)   # enc_s[0]
    w2, b2 = linear(keys[2], keys[3], mid_dim, mid_dim)     # enc_s[2]
    w3, b3 = linear(keys[4], keys[5], mid_dim, mid_dim)     # dec_a[0]
    w4 = jax.nn.initializers.orthogonal(scale=0.01)(
        keys[6], (action_dim, mid_dim), jnp.float32)        # dec_a[2] (layer_norm)
    b4 = jnp.full((action_dim, 1), 1e-6, dtype=jnp.float32)
    return dict(w1=w1, b1=b1, w2=w2, b2=b2, w3=w3, b3=b3, w4=w4, b4=b4)


def interppo_reference(x, params):
    """Pure-JAX reference matching InterPPO.forward (un-folded layers)."""
    h = jnp.maximum(x @ params["w1"].T + params["b1"].T, 0.0)
    h = h @ params["w2"].T + params["b2"].T
    h = jnp.maximum(h @ params["w3"].T + params["b3"].T, 0.0)
    a = h @ params["w4"].T + params["b4"].T
    return jnp.tanh(a)


# TODO(synk): the conv branch of enc_s (len(state_dim) > 1: six strided Conv2d
# layers) and the auxiliary heads used by get_action_noise / get_q_logprob /
# get_q1_q2_logprob (dec_q1, dec_q2, a_std_log) are not implemented here; only
# the forward() path of the 1-D state branch is covered.

if __name__ == "__main__":
    key = jax.random.PRNGKey(0)
    k_param, k_x1, k_x2 = jax.random.split(key, 3)

    STATE_DIM = 16    # state_dim = (16,)
    ACTION_DIM = 4    # action_dim
    MID_DIM = 32      # mid_dim

    params = init_params(k_param, STATE_DIM, ACTION_DIM, MID_DIM)

    # Small batch, default bf16 operands with f32 accumulation.
    x_small = jax.random.normal(k_x1, (8, STATE_DIM), dtype=jnp.float32)
    y_small = jax.block_until_ready(interppo_forward(x_small, params))
    y_small_ref = interppo_reference(x_small, params)
    assert y_small.shape == (8, ACTION_DIM)
    assert jnp.allclose(y_small, y_small_ref, atol=2e-2, rtol=2e-2), \
        "small-batch (bf16) mismatch vs reference"

    # Same batch, f32 operand path (tighter check of the w2/w3 fold + layout).
    y_small_f32 = jax.block_until_ready(
        interppo_forward(x_small, params, compute_dtype=jnp.float32))
    assert jnp.allclose(y_small_f32, y_small_ref, atol=1e-3, rtol=1e-3), \
        "small-batch (f32) mismatch vs reference"

    # Ragged batch exercising padding and grid > 1 ('parallel' axis; both TCs on v7x).
    x_big = jax.random.normal(k_x2, (300, STATE_DIM), dtype=jnp.float32)
    y_big = jax.block_until_ready(interppo_forward(x_big, params, block_b=128))
    y_big_ref = interppo_reference(x_big, params)
    assert y_big.shape == (300, ACTION_DIM)
    assert jnp.allclose(y_big, y_big_ref, atol=2e-2, rtol=2e-2), \
        "multi-tile mismatch vs reference"

    print("KERNEL_OK")
</pallas_src>

<mosaic_0001>
module attributes {stable_mosaic.version = 11 : i64} {
  func.func @_interppo_fwd_kernel(%arg0: i32, %arg1: memref<128x16xf32, #tpu.memory_space<vmem>>, %arg2: memref<32x16xbf16, #tpu.memory_space<vmem>>, %arg3: memref<32x32xbf16, #tpu.memory_space<vmem>>, %arg4: memref<32x2xf32, #tpu.memory_space<vmem>>, %arg5: memref<4x32xbf16, #tpu.memory_space<vmem>>, %arg6: memref<4x1xf32, #tpu.memory_space<vmem>>, %arg7: memref<4x128xf32, #tpu.memory_space<vmem>>) attributes {dimension_semantics = [#tpu.dimension_semantics<parallel>], iteration_bounds = array<i64: 1>, scalar_prefetch = 0 : i64, scratch_operands = 0 : i64, tpu.core_type = #tpu.core_type<tc>, window_params = [{transform_indices = @transform_0, window_bounds = array<i64: 128, 16>}, {pipeline_mode = #tpu.pipeline_mode<synchronous>, transform_indices = @transform_1, window_bounds = array<i64: 32, 16>}, {pipeline_mode = #tpu.pipeline_mode<synchronous>, transform_indices = @transform_2, window_bounds = array<i64: 32, 32>}, {pipeline_mode = #tpu.pipeline_mode<synchronous>, transform_indices = @transform_3, window_bounds = array<i64: 32, 2>}, {pipeline_mode = #tpu.pipeline_mode<synchronous>, transform_indices = @transform_4, window_bounds = array<i64: 4, 32>}, {pipeline_mode = #tpu.pipeline_mode<synchronous>, transform_indices = @transform_5, window_bounds = array<i64: 4, 1>}, {transform_indices = @transform_6, window_bounds = array<i64: 4, 128>}]} {
    %c0 = arith.constant 0 : index
    %c0_0 = arith.constant 0 : index
    %0 = vector.load %arg1[%c0, %c0_0] : memref<128x16xf32, #tpu.memory_space<vmem>>, vector<128x16xf32>
    %1 = arith.truncf %0 : vector<128x16xf32> to vector<128x16xbf16>
    %c0_1 = arith.constant 0 : index
    %c0_2 = arith.constant 0 : index
    %2 = vector.load %arg4[%c0_1, %c0_2] : memref<32x2xf32, #tpu.memory_space<vmem>>, vector<32x1xf32>
    %c0_3 = arith.constant 0 : index
    %c1 = arith.constant 1 : index
    %3 = vector.load %arg4[%c0_3, %c1] : memref<32x2xf32, #tpu.memory_space<vmem>>, vector<32x1xf32>
    %c0_4 = arith.constant 0 : index
    %c0_5 = arith.constant 0 : index
    %4 = vector.load %arg2[%c0_4, %c0_5] : memref<32x16xbf16, #tpu.memory_space<vmem>>, vector<32x16xbf16>
    %cst = arith.constant dense<0.000000e+00> : vector<32x128xf32>
    %5 = tpu.matmul %4, %1, %cst {dimension_numbers = #tpu.dot_dimension_numbers<[1], [1], [0], [0], [0, 0, 1, 0], [], []>} : vector<32x16xbf16>, vector<128x16xbf16>, vector<32x128xf32> -> vector<32x128xf32>
    %6 = vector.broadcast %2 : vector<32x1xf32> to vector<32x128xf32>
    %7 = arith.addf %5, %6 : vector<32x128xf32>
    %cst_6 = arith.constant 0.000000e+00 : f32
    %8 = vector.broadcast %cst_6 : f32 to vector<32x128xf32>
    %9 = arith.maximumf %7, %8 : vector<32x128xf32>
    %c0_7 = arith.constant 0 : index
    %c0_8 = arith.constant 0 : index
    %10 = vector.load %arg3[%c0_7, %c0_8] : memref<32x32xbf16, #tpu.memory_space<vmem>>, vector<32x32xbf16>
    %11 = arith.truncf %9 : vector<32x128xf32> to vector<32x128xbf16>
    %cst_9 = arith.constant dense<0.000000e+00> : vector<32x128xf32>
    %12 = tpu.matmul %10, %11, %cst_9 {dimension_numbers = #tpu.dot_dimension_numbers<[1], [0], [0], [1], [0, 0, 1, 1], [], []>} : vector<32x32xbf16>, vector<32x128xbf16>, vector<32x128xf32> -> vector<32x128xf32>
    %13 = vector.broadcast %3 : vector<32x1xf32> to vector<32x128xf32>
    %14 = arith.addf %12, %13 : vector<32x128xf32>
    %cst_10 = arith.constant 0.000000e+00 : f32
    %15 = vector.broadcast %cst_10 : f32 to vector<32x128xf32>
    %16 = arith.maximumf %14, %15 : vector<32x128xf32>
    %c0_11 = arith.constant 0 : index
    %c0_12 = arith.constant 0 : index
    %17 = vector.load %arg5[%c0_11, %c0_12] : memref<4x32xbf16, #tpu.memory_space<vmem>>, vector<4x32xbf16>
    %18 = arith.truncf %16 : vector<32x128xf32> to vector<32x128xbf16>
    %cst_13 = arith.constant dense<0.000000e+00> : vector<4x128xf32>
    %19 = tpu.matmul %17, %18, %cst_13 {dimension_numbers = #tpu.dot_dimension_numbers<[1], [0], [0], [1], [0, 0, 1, 1], [], []>} : vector<4x32xbf16>, vector<32x128xbf16>, vector<4x128xf32> -> vector<4x128xf32>
    %c0_14 = arith.constant 0 : index
    %c0_15 = arith.constant 0 : index
    %20 = vector.load %arg6[%c0_14, %c0_15] : memref<4x1xf32, #tpu.memory_space<vmem>>, vector<4x1xf32>
    %21 = vector.broadcast %20 : vector<4x1xf32> to vector<4x128xf32>
    %22 = arith.addf %19, %21 : vector<4x128xf32>
    %23 = math.tanh %22 : vector<4x128xf32>
    %c0_16 = arith.constant 0 : index
    %c0_17 = arith.constant 0 : index
    %24 = vector.load %arg7[%c0_16, %c0_17] : memref<4x128xf32, #tpu.memory_space<vmem>>, vector<4x128xf32>
    tpu.vector_store %arg7[%c0_16, %c0_17], %23 {strides = array<i32>} : memref<4x128xf32, #tpu.memory_space<vmem>>, vector<4x128xf32>,
    return
  }
  func.func @transform_0(%arg0: i32) -> (i32, i32) {
    %c0_i32 = arith.constant 0 : i32
    %c0_i32_0 = arith.constant 0 : i32
    return %arg0, %c0_i32 : i32, i32
  }
  func.func @transform_1(%arg0: i32) -> (i32, i32) {
    %c0_i32 = arith.constant 0 : i32
    %c0_i32_0 = arith.constant 0 : i32
    %c0_i32_1 = arith.constant 0 : i32
    return %c0_i32, %c0_i32_0 : i32, i32
  }
  func.func @transform_2(%arg0: i32) -> (i32, i32) {
    %c0_i32 = arith.constant 0 : i32
    %c0_i32_0 = arith.constant 0 : i32
    %c0_i32_1 = arith.constant 0 : i32
    return %c0_i32, %c0_i32_0 : i32, i32
  }
  func.func @transform_3(%arg0: i32) -> (i32, i32) {
    %c0_i32 = arith.constant 0 : i32
    %c0_i32_0 = arith.constant 0 : i32
    %c0_i32_1 = arith.constant 0 : i32
    return %c0_i32, %c0_i32_0 : i32, i32
  }
  func.func @transform_4(%arg0: i32) -> (i32, i32) {
    %c0_i32 = arith.constant 0 : i32
    %c0_i32_0 = arith.constant 0 : i32
    %c0_i32_1 = arith.constant 0 : i32
    return %c0_i32, %c0_i32_0 : i32, i32
  }
  func.func @transform_5(%arg0: i32) -> (i32, i32) {
    %c0_i32 = arith.constant 0 : i32
    %c0_i32_0 = arith.constant 0 : i32
    %c0_i32_1 = arith.constant 0 : i32
    return %c0_i32, %c0_i32_0 : i32, i32
  }
  func.func @transform_6(%arg0: i32) -> (i32, i32) {
    %c0_i32 = arith.constant 0 : i32
    %c0_i32_0 = arith.constant 0 : i32
    return %c0_i32, %arg0 : i32, i32
  }
}

</mosaic_0001>

<bundles_post_ra>
// kernel: tpu_custom_call.1
= control target key start
LH: loop header
LB: loop body
LE: loop exit
PB: predicated region body
PF: predicated region fallthrough
CT: control target
= control target key end

     0   :  { %vm87_vm0 = vcmask 130048   ;;  %v442_v5 = vmov 0   ;;  %s597_s0 = inlined_call_operand.vmem [shape: f32[128,16], index: 0, kind: input, shape index: {}]   ;;  %s598_s1 = inlined_call_operand.vmem [shape: bf16[32,16], index: 1, kind: input, shape index: {}]   ;;  %s599_s2 = inlined_call_operand.vmem [shape: bf16[32,32], index: 2, kind: input, shape index: {}]   ;;  %s600_s3 = inlined_call_operand.vmem [shape: f32[32,2], index: 3, kind: input, shape index: {}]   ;;  %s601_s4 = inlined_call_operand.vmem [shape: bf16[4,32], index: 4, kind: input, shape index: {}]   ;;  %s602_s5 = inlined_call_operand.vmem [shape: f32[4,1], index: 5, kind: input, shape index: {}]   ;;  %s603_s6 = inlined_call_operand.hbm [shape: f32[4,128], index: 6, kind: output, shape index: {}]  }
   0x1   :  { %v25_v0 = vld [vmem:[%s597_s0] sm:$0xff]  ;;  %v26_v1 = vld [vmem:[%s597_s0 + $0x8] sm:$0xff]  ;;  %v27_v2 = vld [vmem:[%s597_s0 + $0x10] sm:$0xff]  ;;  %406 = vset.pattern.permute.xlu0 %v442_v5  ;;  %407 = vset.pattern.permute.xlu1 %v442_v5 }
   0x2   :  { %v41_v3 = vpack.c.bf16 %v26_v1, %v25_v0  ;;  %v28_v4 = vld [vmem:[%s597_s0 + $0x18] sm:$0xff]  ;;  %v29_v8 = vld [vmem:[%s597_s0 + $0x20] sm:$0xff]  ;;  %v30_v9 = vld [vmem:[%s597_s0 + $0x28] sm:$0xff] }
   0x3   :  { %v42_v6 = vpack.c.bf16 %v28_v4, %v27_v2  ;;  %v412_v10 = vld [vmem:[%s598_s1] sm:$0xff]   ;;  %v51_v12 = vld [vmem:[%s600_s3 + $0x10] sm:$0xff]  ;;  %v50_v14 = vld [vmem:[%s600_s3 + $0x8] sm:$0xff]  ;;  %v43_v15 = vpack.c.bf16 %v30_v9, %v29_v8 }
   0x4   :  { %393 = vmatprep.subr.msk.bf16.mxu0 %vm87_vm0, %v41_v3  ;;  %v95_v7 = vsel %vm87_vm0, %v41_v3, 0  ;;  %v49_v11 = vld [vmem:[%s600_s3] sm:$0xff]  ;;  %373 = vmatprep.mubr.msk.bf16.mxu0 %vm87_vm0, %v412_v10  ;;  %v52_v16 = vld [vmem:[%s600_s3 + $0x18] sm:$0xff] }
   0x5   :  { %358 = vmatpush3.bf16.xpose.msra.mxu0 %v95_v7  ;;  %v98_v13 = vsel %vm87_vm0, %v42_v6, 0  ;;  %59 = vperm.xlu0 %406, %v49_v11  }
   0x6   :  { %394 = vmatprep.subr.msk.bf16.mxu0 %vm87_vm0, %v42_v6  ;;  %69 = vperm.xlu1 %407, %v51_v12  }
   0x7   :  { %11 = vsyncpa [#allocation3], 0  ;;  %v31_v17 = vld [vmem:[%s597_s0 + $0x30] sm:$0xff]  ;;  %v32_v18 = vld [vmem:[%s597_s0 + $0x38] sm:$0xff]  ;;  %v101_v19 = vsel %vm87_vm0, %v43_v15, 0  ;;  %vm203_vm1 = vcmask 261120  }
   0x8   :  { %v44_v20 = vpack.c.bf16 %v32_v18, %v31_v17  ;;  %v33_v21 = vld [vmem:[%s597_s0 + $0x40] sm:$0xff]  ;;  %v34_v22 = vld [vmem:[%s597_s0 + $0x48] sm:$0xff]  ;;  %v35_v25 = vld [vmem:[%s597_s0 + $0x50] sm:$0xff]  ;;  %v443_v40 = vmov 1   ;;  %v444_v60 = vmov 0.0   ;;  %vm445_vm2 = vmmov 0  }
   0x9   :  { %64 = vperm.xlu0 %406, %v50_v14   ;;  %v45_v24 = vpack.c.bf16 %v34_v22, %v33_v21  ;;  %v36_v26 = vld [vmem:[%s597_s0 + $0x58] sm:$0xff]  ;;  %v37_v29 = vld [vmem:[%s597_s0 + $0x60] sm:$0xff]  ;;  %v38_v30 = vld [vmem:[%s597_s0 + $0x68] sm:$0xff]  ;;  %s446_s20 = smov [#allocation2]  }
   0xa   :  { %74 = vperm.xlu1 %407, %v52_v16   ;;  %v104_v23 = vsel %vm87_vm0, %v44_v20, 0  ;;  %v46_v28 = vpack.c.bf16 %v36_v26, %v35_v25  ;;  %v47_v32 = vpack.c.bf16 %v38_v30, %v37_v29  ;;  %v39_v33 = vld [vmem:[%s597_s0 + $0x70] sm:$0xff]  ;;  %v40_v34 = vld [vmem:[%s597_s0 + $0x78] sm:$0xff]  ;;  %v413_v38 = vld [vmem:[%s598_s1 + $0x8] sm:$0xff]   ;;  %s323_s21 = sshll.u32 %s446_s20, 4  ;;  %s324_s21 = int_to_ptr.vmem [resolvable:$true] %s323_s21 }
   0xb   :  { %v107_v27 = vsel %vm87_vm0, %v45_v24, 0  ;;  %v48_v36 = vpack.c.bf16 %v40_v34, %v39_v33  ;;  %v414_v39 = vld [vmem:[%s599_s2] sm:$0xff]   ;;  %v415_v59 = vld [vmem:[%s599_s2 + $0x8] sm:$0xff]   ;;  %s418_s22 = scalar_lea.vmem %s324_s21, 64  ;;  %p423_p1 = scmp.lt.s32.totalorder %s324_s21, %s324_s21 }
   0xc   :  { %v110_v31 = vsel %vm87_vm0, %v46_v28, 0  ;;  %v113_v35 = vsel %vm87_vm0, %v47_v32, 0  ;;  %381 = vmatprep.mubr.msk.bf16.mxu1 %vm203_vm1, %v414_v39  ;;  %v266_v61 = vld [vmem:[%s602_s5] sm:$0xf]  ;;  %p419_p0 = scmp.ne.s32.totalorder %s324_s21, %s418_s22  ;;  %p424_p2 = scmp.lt.s32.totalorder %s418_s22, %s418_s22 }
   0xd   :  { %360 = vmatpush3.bf16.xpose.msra.mxu0 %v98_v13  ;;  %v116_v37 = vsel %vm87_vm0, %v48_v36, 0  ;;  %408 = vset.pattern.permute.xlu0 %v443_v40 }
   0xe   :  { %395 = vmatprep.subr.msk.bf16.mxu0 %vm87_vm0, %v43_v15  ;;  %409 = vset.pattern.permute.xlu1 %v443_v40  ;;  %p425_p3 = por %p424_p2, %p423_p1 }
   0xf   :  { %182 = vperm.xlu1 %409, %v50_v14   ;;  %178 = vperm.xlu0 %408, %v49_v11  }
  0x10   :  { %p426_p4 = pnand %p425_p3, %p419_p0 }
  0x13   :  { %186 = vperm.xlu1 %409, %v51_v12   ;;  %190 = vperm.xlu0 %408, %v52_v16   ;;  %v263_v16 = vld [vmem:[%s601_s4] sm:$0x3] }
  0x15   :  { %362 = vmatpush3.bf16.xpose.msra.mxu0 %v101_v19 }
  0x16   :  { %396 = vmatprep.subr.msk.bf16.mxu0 %vm87_vm0, %v44_v20 }
  0x17   :  { %410 = vset.pattern.permute.xlu1 %v442_v5  ;;  %411 = vset.pattern.permute.xlu0 %v442_v5 }
  0x18   :  { %269 = vperm.xlu1 %410, %v266_v61  }
  0x1d   :  { %364 = vmatpush3.bf16.xpose.msra.mxu0 %v104_v23 }
  0x1e   :  { %397 = vmatprep.subr.msk.bf16.mxu0 %vm87_vm0, %v45_v24 }
  0x25   :  { %366 = vmatpush3.bf16.xpose.msra.mxu0 %v107_v27 }
  0x26   :  { %398 = vmatprep.subr.msk.bf16.mxu0 %vm87_vm0, %v46_v28 }
  0x2d   :  { %368 = vmatpush3.bf16.xpose.msra.mxu0 %v110_v31 }
  0x2e   :  { %399 = vmatprep.subr.msk.bf16.mxu0 %vm87_vm0, %v47_v32 }
  0x35   :  { %370 = vmatpush3.bf16.xpose.msra.mxu0 %v113_v35 }
  0x36   :  { %400 = vmatprep.subr.msk.bf16.mxu0 %vm87_vm0, %v48_v36 }
  0x3d   :  { %372 = vmatpush3.bf16.xpose.msra.mxu0 %v116_v37 }
  0x44   :  { %374 = vmatmul.mubr.msk.bf16.vlgmr.msra.gmra.mrb[0].mxu0 %vm87_vm0, %v413_v38 }
  0x84   :  { %v60_v42 = vpop.permute.xlu0 %59 }
  0x85   :  { %v70_v41 = vpop.permute.xlu1 %69 }
  0x88   :  { %v65_v49 = vpop.permute.xlu0 %64 }
  0x89   :  { %v75_v44 = vpop.permute.xlu1 %74 }
  0x8e   :  { %v183_v62 = vpop.permute.xlu1 %182  ;;  %v179_v63 = vpop.permute.xlu0 %178 }
  0x92   :  { %v187_v0 = vpop.permute.xlu1 %186  ;;  %v191_v2 = vpop.permute.xlu0 %190 }
  0x97   :  { %v270_v17 = vpop.permute.xlu1 %269 }
 0x117   :  { %v375_v43 = vpop.f32.mrb[0].mxu0 }
 0x118   :  { %v161_v45 = vadd.f32 %v375_v43, %v70_v41  ;;  %v152_v46 = vpop.f32.mrb[1].mxu0 }
 0x119   :  { %v153_v47 = vadd.f32 %v152_v46, %v60_v42  ;;  %v376_v48 = vpop.f32.mrb[2].mxu0 }
 0x11a   :  { %v164_v50 = vadd.f32 %v376_v48, %v75_v44  ;;  %v155_v51 = vpop.f32.mrb[3].mxu0  ;;  %v169_v53 = vmax.f32 %v161_v45, 0.0 }
 0x11b   :  { %v156_v52 = vadd.f32 %v155_v51, %v65_v49  ;;  %v167_v55 = vmax.f32 %v153_v47, 0.0 }
 0x11c   :  { %v170_v54 = vmax.f32 %v164_v50, 0.0 }
 0x11d   :  { %v168_v56 = vmax.f32 %v156_v52, 0.0 }
 0x11e   :  { %v176_v57 = vpack.c.bf16 %v170_v54, %v169_v53 }
 0x11f   :  { %v175_v58 = vpack.c.bf16 %v168_v56, %v167_v55 }
 0x121   :  { %377 = vmatprep.subr.bf16.mxu1 %v175_v58 }
 0x122   :  { %378 = vmatpush3.bf16.msra.mxu1 %v175_v58 }
 0x123   :  { %379 = vmatprep.subr.bf16.mxu1 %v176_v57 }
 0x126   :  { %380 = vmatpush3.bf16.msra.mxu1 %v176_v57 }
 0x127   :  { %385 = vmatprep.subr.bf16.mxu1 %v444_v60 }
 0x129   :  { %382 = vmatmul.mubr.msk.bf16.vlgmr.msra.gmra.mrb[0].mxu1 %vm203_vm1, %v415_v59 }
 0x12a   :  { %389 = vmatprep.mubr.msk.bf16.mxu1 %vm445_vm2, %v444_v60 }
 0x1fc   :  { %v383_v1 = vpop.f32.mrb[0].mxu1 }
 0x1fd   :  { %v253_v3 = vadd.f32 %v383_v1, %v187_v0  ;;  %v244_v4 = vpop.f32.mrb[1].mxu1 }
 0x1fe   :  { %v245_v5 = vadd.f32 %v244_v4, %v179_v63  ;;  %v384_v6 = vpop.f32.mrb[2].mxu1 }
 0x1ff   :  { %v256_v7 = vadd.f32 %v384_v6, %v191_v2  ;;  %v247_v8 = vpop.f32.mrb[3].mxu1  ;;  %v261_v10 = vmax.f32 %v253_v3, 0.0 }
 0x200   :  { %v248_v9 = vadd.f32 %v247_v8, %v183_v62  ;;  %v259_v12 = vmax.f32 %v245_v5, 0.0 }
 0x201   :  { %v262_v11 = vmax.f32 %v256_v7, 0.0 }
 0x202   :  { %v260_v13 = vmax.f32 %v248_v9, 0.0 }
 0x203   :  { %v265_v14 = vpack.c.bf16 %v262_v11, %v261_v10 }
 0x204   :  { %v264_v15 = vpack.c.bf16 %v260_v13, %v259_v12 }
 0x206   :  { %386 = vmatpush3.bf16.msra.mxu1 %v264_v15 }
 0x207   :  { %387 = vmatprep.subr.bf16.mxu1 %v444_v60 }
 0x20a   :  { %388 = vmatpush3.bf16.msra.mxu1 %v265_v14 }
 0x20d   :  { %390 = vmatmul.mubr.msk.bf16.vlgmr.msra.gmra.mrb[4].mxu1 %vm203_vm1, %v263_v16 }
 0x2e0   :  { %v309_v18 = vpop.f32.mrb[4].mxu1 }
 0x2e1   :  { %v310_v19 = vadd.f32 %v309_v18, %v270_v17  ;;  %v391_v20 = vpop.f32.mrb[5].mxu1 }
 0x2e2   :  { %v312_v21 = vpop.f32.mrb[6].mxu1 }
 0x2e3   :  { %416 = vtanh.f32 %v310_v19  ;;  %v392_v22 = vpop.f32.mrb[7].mxu1 }
 0x2ed   :  { %v417_v23 = vpop.eup %416 }
 0x2ee   :  { %316 = vst [vmem:[#allocation2] sm:$0xf] %v417_v23 }
 0x2ef   :  { %429 = shalt.err (!%p426_p4)
}
 0x2f0   :  { %s430_s23 = scalar_lea.hbm %s603_s6, 64 }
 0x2f1   :  { %p431_p5 = scmp.ne.s32.totalorder %s603_s6, %s430_s23  ;;  %p434_p6 = scmp.lt.u32.totalorder %s430_s23, %s603_s6 }
 0x2f3   :  { %p436_p7 = pnand %p434_p6, %p431_p5 }
 0x2f5   :  { %439 = shalt.err (!%p436_p7)
}
 0x2f6   :  { %326 = dma.vmem_to_hbm [thread:$0]  %s324_s21, 64, %s603_s6, [#allocation3]  }
 0x2f7   :  { %440 = dma.done.wait [#allocation3], 64  }
 0x2f8   :  { %441 = vsyncadd [#allocation3], 4294967232 }
 0x2f9   :  { %330 = vsyncpa [#allocation3], 1 }

</bundles_post_ra>
